<compile_context>
chip_gen: v6e
topology: v6e:2x2x1
jax: 0.10.0
libtpu: 0.0.40
codegen_flags: <defaults>
</compile_context>

<pallas_src>
import functools
import math

import jax
import jax.numpy as jnp
from jax import lax
from jax.experimental import pallas as pl
from jax.experimental.pallas import tpu as pltpu


@functools.lru_cache(maxsize=None)
def _vmem_limit_bytes() -> int:
    """Scoped-VMEM budget: ~3/4 of physical, capped, safe fallback on v7x."""
    try:
        cap = int(pltpu.get_tpu_info().vmem_capacity_bytes)
        return int(min(100 * 1024 * 1024, (cap * 3) // 4))
    except Exception:
        return 48 * 1024 * 1024  # conservative: fits every generation incl. v7x


# ---------------------------------------------------------------------------
# Kernel 1: dense projection  y = (x @ W + b) * scale   (lane-dense output)
# ---------------------------------------------------------------------------
def _proj_kernel(x_ref, w_ref, b_ref, o_ref, *, scale):
    # x: (1, tile, D)   w: (D, Dout) resident   b: (1, Dout)   o: (1, tile, Dout)
    y = jnp.dot(x_ref[0], w_ref[...], preferred_element_type=jnp.float32)
    y = (y + b_ref[...].astype(jnp.float32)) * scale
    o_ref[0] = y.astype(o_ref.dtype)


def _project(x, w, b, *, tile, scale=1.0):
    B, S, D = x.shape
    Dout = w.shape[1]
    kernel = functools.partial(_proj_kernel, scale=scale)
    return pl.pallas_call(
        kernel,
        out_shape=jax.ShapeDtypeStruct((B, S, Dout), x.dtype),
        grid_spec=pltpu.PrefetchScalarGridSpec(
            num_scalar_prefetch=0,
            grid=(B, S // tile),
            in_specs=[
                pl.BlockSpec((1, tile, D), lambda b_, s: (b_, s, 0)),
                # Full weight, constant index_map -> DMA'd once, kept resident.
                # TODO(synk): tile the K dimension for very large D on v7x (64 MiB VMEM).
                pl.BlockSpec((D, Dout), lambda b_, s: (0, 0)),
                pl.BlockSpec((1, Dout), lambda b_, s: (0, 0)),
            ],
            out_specs=pl.BlockSpec((1, tile, Dout), lambda b_, s: (b_, s, 0)),
        ),
        compiler_params=pltpu.CompilerParams(
            dimension_semantics=("parallel", "parallel"),
            vmem_limit_bytes=_vmem_limit_bytes(),
        ),
    )(x, w, b)


# ---------------------------------------------------------------------------
# Kernel 2: flash attention (all heads per grid step) + fused output projection
#   grid = (B, Sq/tq, Skv/tk); output block (1, tq, D) resident across kv axis
# ---------------------------------------------------------------------------
def _flash_attn_kernel(q_ref, k_ref, v_ref, wo_ref, bo_ref, o_ref,
                       m_sc, l_sc, acc_sc, *, num_heads, head_dim):
    ki = pl.program_id(2)
    nk = pl.num_programs(2)

    @pl.when(ki == 0)
    def _():
        m_sc[...] = jnp.full_like(m_sc, -jnp.inf)
        l_sc[...] = jnp.zeros_like(l_sc)
        acc_sc[...] = jnp.zeros_like(acc_sc)

    q = q_ref[0]                       # (tq, D) native dtype, scale pre-folded
    k = k_ref[0]                       # (tk, D)
    v = v_ref[0]                       # (tk, D)

    # Static per-head loop: K/V blocks are loaded once for all heads.
    # TODO(synk): pack 2 heads per MXU pass when head_dim < 128 (v6e/v7x).
    for h in range(num_heads):
        lo = h * head_dim
        hi = lo + head_dim
        qh = q[:, lo:hi]               # (tq, hd)
        kh = k[:, lo:hi]               # (tk, hd)
        vh = v[:, lo:hi]               # (tk, hd)

        # scores = qh @ kh^T without an explicit transpose (contract last dims).
        s = lax.dot_general(qh, kh, (((1,), (1,)), ((), ())),
                            preferred_element_type=jnp.float32)      # (tq, tk)
        # TODO(synk): optional attention-mask path (mask is None in this module run);
        # a masked path must guard m_new against fully-masked kv tiles (-inf - -inf).

        m_prev = m_sc[h]                                             # (tq, 1)
        m_new = jnp.maximum(m_prev, jnp.max(s, axis=-1, keepdims=True))
        alpha = jnp.exp(m_prev - m_new)
        p = jnp.exp(s - m_new)                                       # f32
        l_sc[h] = alpha * l_sc[h] + jnp.sum(p, axis=-1, keepdims=True)
        acc_sc[h] = alpha * acc_sc[h] + jnp.dot(
            p.astype(vh.dtype), vh, preferred_element_type=jnp.float32)
        m_sc[h] = m_new

    # Epilogue: deferred normalization, then ONE (tq, D) @ (D, D) output
    # projection against the resident Wo, and a single lane-dense store.
    @pl.when(ki == nk - 1)
    def _():
        heads = []
        for h in range(num_heads):
            inv_l = pl.reciprocal(l_sc[h], approx=False)
            heads.append(acc_sc[h] * inv_l)
        ctx = jnp.concatenate(heads, axis=-1)                        # (tq, D) f32
        out = jnp.dot(ctx.astype(wo_ref.dtype), wo_ref[...],
                      preferred_element_type=jnp.float32)
        o_ref[0] = (out + bo_ref[...].astype(jnp.float32)).astype(o_ref.dtype)


# ---------------------------------------------------------------------------
# Wrapper
# ---------------------------------------------------------------------------
def multi_head_attention(query, key, value, params, *, num_heads: int):
    """query: (B, Sq, D); key/value: (B, Skv, D).
    params: (D, D) weights stored as (D_in, D_out) and (1, D) biases."""
    B, Sq, D = query.shape
    _, Skv, _ = key.shape
    assert D % num_heads == 0
    hd = D // num_heads

    # Larger q tiles raise flash arithmetic intensity (KV re-streamed Sq/tq times).
    ts_q = min(Sq, 512)
    ts_kv = min(Skv, 512)
    assert Sq % ts_q == 0 and Skv % ts_kv == 0  # TODO(synk): pad ragged seq lens
    proj_tile_q = min(Sq, 512)
    proj_tile_kv = min(Skv, 512)

    scale = 1.0 / math.sqrt(hd)

    # Stage 1: lane-dense projections; 1/sqrt(hd) folded into the Q projection.
    # TODO(synk): fuse K/V (and Q for self-attention) into one (D, 2D/3D) matmul
    # when the input tensors alias, to cut activation reads further.
    qp = _project(query, params["wq"], params["bq"], tile=proj_tile_q, scale=scale)
    kp = _project(key, params["wk"], params["bk"], tile=proj_tile_kv)
    vp = _project(value, params["wv"], params["bv"], tile=proj_tile_kv)

    # Stage 2: flash attention over all heads + fused output projection.
    kernel = functools.partial(_flash_attn_kernel, num_heads=num_heads, head_dim=hd)
    return pl.pallas_call(
        kernel,
        out_shape=jax.ShapeDtypeStruct((B, Sq, D), query.dtype),
        grid_spec=pltpu.PrefetchScalarGridSpec(
            num_scalar_prefetch=0,
            grid=(B, Sq // ts_q, Skv // ts_kv),
            in_specs=[
                pl.BlockSpec((1, ts_q, D), lambda b, q, k: (b, q, 0)),
                # TODO(synk): pipeline_mode=pl.Buffered(3) on K/V once verified on
                # the target jax version (small latency-dominated DMAs).
                pl.BlockSpec((1, ts_kv, D), lambda b, q, k: (b, k, 0)),
                pl.BlockSpec((1, ts_kv, D), lambda b, q, k: (b, k, 0)),
                # Full Wo resident (constant index_map) -> DMA'd once.
                # TODO(synk): stream Wo in N-tiles when D^2 exceeds the v7x budget.
                pl.BlockSpec((D, D), lambda b, q, k: (0, 0)),
                pl.BlockSpec((1, D), lambda b, q, k: (0, 0)),
            ],
            out_specs=pl.BlockSpec((1, ts_q, D), lambda b, q, k: (b, q, 0)),
            scratch_shapes=[
                pltpu.VMEM((num_heads, ts_q, 1), jnp.float32),   # running max m
                pltpu.VMEM((num_heads, ts_q, 1), jnp.float32),   # running denom l
                pltpu.VMEM((num_heads, ts_q, hd), jnp.float32),  # per-head numerator
            ],
        ),
        compiler_params=pltpu.CompilerParams(
            dimension_semantics=("parallel", "parallel", "arbitrary"),
            vmem_limit_bytes=_vmem_limit_bytes(),
        ),
    )(qp, kp, vp, params["wo"], params["bo"])


# ---------------------------------------------------------------------------
# Pure-JAX reference mirroring the PyTorch forward exactly.
# ---------------------------------------------------------------------------
def _reference(query, key, value, params, *, num_heads: int):
    B, S, D = query.shape
    hd = D // num_heads

    def lin(x, w, b):
        return x @ w + b  # w already (D_in, D_out)

    def split(x):  # (B,S,D) -> (B,H,S,hd)
        return x.reshape(B, -1, num_heads, hd).transpose(0, 2, 1, 3)

    Q = split(lin(query, params["wq"], params["bq"]))
    K = split(lin(key, params["wk"], params["bk"]))
    V = split(lin(value, params["wv"], params["bv"]))

    scores = jnp.einsum("bhqd,bhkd->bhqk", Q, K) / jnp.sqrt(hd).astype(Q.dtype)
    attn = jax.nn.softmax(scores, axis=-1)
    out = jnp.einsum("bhqk,bhkd->bhqd", attn, V)
    out = out.transpose(0, 2, 1, 3).reshape(B, S, D)
    return lin(out, params["wo"], params["bo"])


if __name__ == "__main__":
    B, S, D, H = 2, 8, 32, 4

    key0 = jax.random.PRNGKey(0)
    keys = jax.random.split(key0, 11)

    bound = 1.0 / math.sqrt(D)  # mimic nn.Linear default uniform init scale

    def w(k):  # stored as (D_in, D_out) == torch W.T
        return jax.random.uniform(k, (D, D), jnp.float32, -bound, bound)

    def b(k):
        return jax.random.uniform(k, (1, D), jnp.float32, -bound, bound)

    params = {
        "wq": w(keys[0]), "bq": b(keys[1]),
        "wk": w(keys[2]), "bk": b(keys[3]),
        "wv": w(keys[4]), "bv": b(keys[5]),
        "wo": w(keys[6]), "bo": b(keys[7]),
    }

    query = jax.random.normal(keys[8], (B, S, D), jnp.float32)
    key_in = jax.random.normal(keys[9], (B, S, D), jnp.float32)
    value = jax.random.normal(keys[10], (B, S, D), jnp.float32)

    out = multi_head_attention(query, key_in, value, params, num_heads=H)
    out = jax.block_until_ready(out)

    ref = _reference(query, key_in, value, params, num_heads=H)
    assert out.shape == (B, S, D)
    assert jnp.allclose(out, ref, atol=5e-3, rtol=5e-3), "mismatch vs JAX reference"

    print("KERNEL_OK")
</pallas_src>

<mosaic_0001>
module attributes {stable_mosaic.version = 11 : i64} {
  func.func @_proj_kernel(%arg0: i32, %arg1: i32, %arg2: memref<1x8x32xf32, #tpu.memory_space<vmem>>, %arg3: memref<32x32xf32, #tpu.memory_space<vmem>>, %arg4: memref<1x32xf32, #tpu.memory_space<vmem>>, %arg5: memref<1x8x32xf32, #tpu.memory_space<vmem>>) attributes {dimension_semantics = [#tpu.dimension_semantics<parallel>, #tpu.dimension_semantics<parallel>], iteration_bounds = array<i64: 2, 1>, scalar_prefetch = 0 : i64, scratch_operands = 0 : i64, tpu.core_type = #tpu.core_type<tc>, window_params = [{transform_indices = @transform_0, window_bounds = array<i64: 1, 8, 32>}, {pipeline_mode = #tpu.pipeline_mode<synchronous>, transform_indices = @transform_1, window_bounds = array<i64: 32, 32>}, {pipeline_mode = #tpu.pipeline_mode<synchronous>, transform_indices = @transform_2, window_bounds = array<i64: 1, 32>}, {transform_indices = @transform_3, window_bounds = array<i64: 1, 8, 32>}]} {
    %c0 = arith.constant 0 : index
    %c0_0 = arith.constant 0 : index
    %c0_1 = arith.constant 0 : index
    %0 = vector.load %arg2[%c0, %c0_0, %c0_1] : memref<1x8x32xf32, #tpu.memory_space<vmem>>, vector<1x8x32xf32>
    %1 = vector.shape_cast %0 : vector<1x8x32xf32> to vector<8x32xf32>
    %c0_2 = arith.constant 0 : index
    %c0_3 = arith.constant 0 : index
    %2 = vector.load %arg3[%c0_2, %c0_3] : memref<32x32xf32, #tpu.memory_space<vmem>>, vector<32x32xf32>
    %cst = arith.constant dense<0.000000e+00> : vector<8x32xf32>
    %3 = tpu.matmul %1, %2, %cst {dimension_numbers = #tpu.dot_dimension_numbers<[1], [0], [0], [1], [0, 0, 1, 1], [], []>} : vector<8x32xf32>, vector<32x32xf32>, vector<8x32xf32> -> vector<8x32xf32>
    %c0_4 = arith.constant 0 : index
    %c0_5 = arith.constant 0 : index
    %4 = vector.load %arg4[%c0_4, %c0_5] : memref<1x32xf32, #tpu.memory_space<vmem>>, vector<1x32xf32>
    %5 = vector.broadcast %4 : vector<1x32xf32> to vector<8x32xf32>
    %6 = arith.addf %3, %5 : vector<8x32xf32>
    %cst_6 = arith.constant 0.353553385 : f32
    %7 = vector.broadcast %cst_6 : f32 to vector<8x32xf32>
    %8 = arith.mulf %6, %7 : vector<8x32xf32>
    %c0_7 = arith.constant 0 : index
    %c0_8 = arith.constant 0 : index
    %c0_9 = arith.constant 0 : index
    %9 = vector.load %arg5[%c0_7, %c0_8, %c0_9] : memref<1x8x32xf32, #tpu.memory_space<vmem>>, vector<1x8x32xf32>
    %10 = vector.shape_cast %9 : vector<1x8x32xf32> to vector<8x32xf32>
    %11 = vector.shape_cast %8 : vector<8x32xf32> to vector<1x8x32xf32>
    tpu.vector_store %arg5[%c0_7, %c0_8, %c0_9], %11 {strides = array<i32>} : memref<1x8x32xf32, #tpu.memory_space<vmem>>, vector<1x8x32xf32>,
    return
  }
  func.func @transform_0(%arg0: i32, %arg1: i32) -> (i32, i32, i32) {
    %c0_i32 = arith.constant 0 : i32
    %c0_i32_0 = arith.constant 0 : i32
    return %arg0, %arg1, %c0_i32 : i32, i32, i32
  }
  func.func @transform_1(%arg0: i32, %arg1: i32) -> (i32, i32) {
    %c0_i32 = arith.constant 0 : i32
    %c0_i32_0 = arith.constant 0 : i32
    %c0_i32_1 = arith.constant 0 : i32
    return %c0_i32, %c0_i32_0 : i32, i32
  }
  func.func @transform_2(%arg0: i32, %arg1: i32) -> (i32, i32) {
    %c0_i32 = arith.constant 0 : i32
    %c0_i32_0 = arith.constant 0 : i32
    %c0_i32_1 = arith.constant 0 : i32
    return %c0_i32, %c0_i32_0 : i32, i32
  }
  func.func @transform_3(%arg0: i32, %arg1: i32) -> (i32, i32, i32) {
    %c0_i32 = arith.constant 0 : i32
    %c0_i32_0 = arith.constant 0 : i32
    return %arg0, %arg1, %c0_i32 : i32, i32, i32
  }
}

</mosaic_0001>

<bundles_post_ra>
// kernel: tpu_custom_call.1
= control target key start
LH: loop header
LB: loop body
LE: loop exit
PB: predicated region body
PF: predicated region fallthrough
CT: control target
= control target key end

     0   :  { %8 = vsyncpa [#allocation3], 0  ;;  %s858_s0 = inlined_call_operand.hbm [shape: f32[2,8,32], index: 0, kind: input, shape index: {}]   ;;  %s859_s1 = inlined_call_operand.hbm [shape: f32[32,32], index: 1, kind: input, shape index: {}]   ;;  %s860_s2 = inlined_call_operand.vmem [shape: f32[1,32], index: 2, kind: input, shape index: {}]   ;;  %s861_s3 = inlined_call_operand.hbm [shape: f32[2,8,32], index: 3, kind: output, shape index: {}]  }
   0x1   :  { %10 = vsyncpa [#allocation3 + $0x1], 0 }
   0x2   :  { %11 = vsyncpa [#allocation6], 0 }
   0x3   :  { %12 = vsyncpa [#allocation4], 0 }
   0x4   :  { %14 = vsyncpa [#allocation4 + $0x1], 0  ;;  %s688_s12 = smov 0   ;;  %s690_s13 = smov 0  }
   0x5   :  { %s692_s14 = smov 0   ;;  %s694_s15 = smov 0  }
   0x6   :  { %s696_s16 = smov 0   ;;  %s698_s17 = smov 0  }
   0x7 LB: > { %s411_s18 = sadd.s32 4294967295, %s659_s17   ;;  %s412_s19 = sadd.s32 4294967294, %s659_s17   ;;  %s659_s17 = sphi %s698_s17, %s20_s17   ;;  %s655_s16 = sphi %s696_s16, %s879_s16   ;;  %s651_s15 = sphi %s694_s15, %s878_s15   ;;  %s647_s14 = sphi %s692_s14, %s877_s14   ;;  %s643_s13 = sphi %s690_s13, %s876_s13   ;;  %s639_s12 = sphi %s688_s12, %s875_s12  }
   0x8   : > { %p54_p0 = scmp.ne.s32.totalorder %s643_s13, %s639_s12  ;;  %p722_p1 = scmp.eq.s32.totalorder %s411_s18, 0 }
   0x9   : > { %p726_p2 = scmp.eq.s32.totalorder %s411_s18, 1  ;;  %p128_p3 = scmp.eq.s32.totalorder %s412_s19, 1 }
   0xa   : > { %p732_p4 = por %p722_p1, %p54_p0  ;;  %p413_p5 = scmp.ge.s32.totalorder %s659_s17, 1 }
   0xb   : > { %p737_p6 = por %p128_p3, %p54_p0  ;;  %p135_p7 = scmp.lt.s32.totalorder %s659_s17, 3 }
   0xc   : > { %s865_s22 = scalar_select %p732_p4, 1, 0 }
   0xd   : > { %s866_s23 = scalar_select %p737_p6, 1, 0 }
   0xe   : > { %p742_p8 = pnand %p413_p5, %p135_p7  ;;  %s661_s25 = smov [#allocation5]  }
   0xf   : > { %s147_s26 = sshll.u32 %s661_s25, 4  ;;  %s32_s28 = sadd.s32 1, %s655_s16  ;;  %s148_s26 = int_to_ptr.vmem [resolvable:$true] %s147_s26 }
  0x10   : > { %p452_p9 = pneg %p742_p8  ;;  %s532_s29 = scalar_lea.vmem %s148_s26, 512 }
  0x11   : > { %p533_p13 = scmp.ne.s32.totalorder %s148_s26, %s532_s29  ;;  %p540_p5 = scmp.lt.s32.totalorder %s148_s26, %s148_s26 }
  0x12   : > { %p751_p11 = pnand %p452_p9, %p722_p1  ;;  %p541_p7 = scmp.lt.s32.totalorder %s532_s29, %s532_s29 }
  0x14   : > { %p523_p12 = pneg %p751_p11  ;;  %p542_p6 = por %p541_p7, %p540_p5 }
  0x16   : > { %p535_p0 = pnand %p533_p13, %p523_p12 }
  0x18   : > { %p536_p3 = pneg %p535_p0 }
  0x1a   : > { %p543_p4 = pnand %p542_p6, %p536_p3 }
  0x1c   : > { %546 = shalt.err (!%p543_p4)
}
  0x1d   : > { %s662_s30 = smov 128   ;;  %s663_s4 = smov 8  }
  0x1e   : > { %455 = dma.hbm_to_vmem [thread:$0]  (!%p751_p11), %s859_s1, 512, %s148_s26, [#allocation6], %s662_s30, %s662_s30, %s663_s4  }
  0x1f   : > { %p34_p6 = scmp.ge.s32.totalorder %s32_s28, 2  ;;  %s41_s7 = sadd.s32 1, %s647_s14 }
  0x20   : > { %p48_p4 = scmp.ne.s32.totalorder %s647_s14, %s643_s13  ;;  %p49_p9 = scmp.eq.s32.totalorder %s659_s17, 0 }
  0x21   : > { %s881_s28 = smov (%p34_p6, %s32_s28), 0  ;;  %p465_p0 = scmp.lt.s32.totalorder %s659_s17, 2 }
  0x22   : > { %p769_p12 = por %p49_p9, %p48_p4  ;;  %p775_p13 = por %p726_p2, %p48_p4 }
  0x23   : > { %s36_s10 = ssub.s32 %s655_s16, %s881_s28  ;;  %s164_s11 = sand.u32 1, %s647_s14  }
  0x24   : > { %p39_p11 = scmp.eq.s32.totalorder %s36_s10, 0  ;;  %s416_s18 = sshll.u32 %s164_s11, 3 }
  0x25   : > { %s417_s25 = sshll.u32 %s655_s16, 7  ;;  %s168_s30 = scalar_lea.vmem [#allocation2], %s416_s18 }
  0x26   : > { %s784_s19 = scalar_select %p39_p11, %s647_s14, %s41_s7  }
  0x27   : > { %s174_s29 = scalar_lea.hbm %s858_s0, %s417_s25  ;;  %s176_s4 = sshll.u32 %s168_s30, 4  ;;  %s177_s4 = int_to_ptr.vmem [resolvable:$true] %s176_s4 }
  0x28   : > { %p792_p2 = pnand %p465_p0, %p769_p12  ;;  %s165_s5 = scalar_lea.sflag [#allocation3], %s164_s11 }
  0x29   : > { %s560_s6 = scalar_lea.vmem %s177_s4, 128  ;;  %s664_s7 = smov [#allocation2]  }
  0x2a   : > { %p549_p3 = pneg %p792_p2  ;;  %p561_p5 = scmp.ne.s32.totalorder %s177_s4, %s560_s6 }
  0x2b   : > { %s565_s10 = sshll.u32 %s664_s7, 4  ;;  %s566_s10 = int_to_ptr.vmem [resolvable:$false] %s565_s10 }
  0x2c   : > { %p563_p7 = pnand %p561_p5, %p549_p3  ;;  %s567_s25 = scalar_lea.vmem %s566_s10, 256 }
  0x2d   : > { %p568_p4 = scmp.lt.s32.totalorder %s177_s4, %s566_s10  ;;  %p569_p9 = scmp.lt.s32.totalorder %s567_s25, %s560_s6 }
  0x2e   : > { %p564_p6 = pneg %p563_p7 }
  0x2f   : > { %p570_p11 = por %p569_p9, %p568_p4 }
  0x31   : > { %p571_p10 = pnand %p570_p11, %p564_p6 }
  0x33   : > { %574 = shalt.err (!%p571_p10)
}
  0x34   : > { %459 = dma.hbm_to_vmem [thread:$0]  (!%p792_p2), %s174_s29, 128, %s177_s4, %s165_s5  }
  0x35   : > { %185 = sbr.rel (%p742_p8) target bundleno = 280 (0x118), region = 32  ;;  %s803_s8 = sand.u32 (!%p742_p8), 1, %s643_s13  }
  0x36   : > { %s419_s11 = sshll.u32 (!%p742_p8), %s803_s8, 3  ;;  %s188_s18 = scalar_lea.sflag (!%p742_p8), [#allocation3], %s803_s8 }
  0x37   : > { %s191_s26 = scalar_lea.vmem (!%p742_p8), [#allocation2], %s419_s11  ;;  %p872_p12 = scmp.ne.s32.totalorder (!%p742_p8), %s865_s22, 0 }
  0x3a   : > { %626 = dma.done.wait (%p872_p12), %s188_s18, 128  }
  0x3b   : > { %628 = vsyncadd (%p872_p12), %s188_s18, 4294967168 }
  0x3c   : > { %630 = dma.done.wait (%p722_p1), [#allocation6], 512  }
  0x3d   : > { %632 = vsyncadd (%p722_p1), [#allocation6], 4294966784  ;;  %v665_v0 = vmov 0.0   ;;  %vm666_vm0 = vmmov 0   ;;  %v222_v1 = vld [vmem:[#allocation5 + $0x18] sm:$0xff]  ;;  %v221_v2 = vld [vmem:[#allocation5 + $0x10] sm:$0xff] }
  0x3e   : > { %433 = vmatprep.subr.mxu0 %v665_v0  ;;  %441 = vmatprep.mubr.msk.f32.mxu0 %vm666_vm0, %v665_v0  ;;  %v220_v3 = vld [vmem:[#allocation5 + $0x8] sm:$0xff]  ;;  %v219_v4 = vld [vmem:[#allocation5] sm:$0xff]  ;;  %v218_v5 = vld [vmem:[%s191_s26] sm:$0xff]  ;;  %vm230_vm1 = vcmask 261120   ;;  %s425_s24 = sshll.u32 %s651_s15, 7  ;;  %s217_s27 = scalar_lea.vmem [#allocation7], %s419_s11 }
  0x3f   : > { %434 = vmatpush3.msra.mxu0 %v222_v1  ;;  %v422_v6 = vld [vmem:[%s860_s2] ss:$0 sm:$0xff]  ;;  %s321_s29 = sshll.u32 %s217_s27, 4  ;;  %s319_s21 = scalar_lea.hbm %s861_s3, %s425_s24  ;;  %s322_s29 = int_to_ptr.vmem [resolvable:$true] %s321_s29 }
  0x40   : > { %435 = vmatprep.subr.mxu0 %v665_v0  ;;  %s307_s5 = scalar_lea.sflag [#allocation4], %s803_s8  ;;  %s575_s6 = scalar_lea.vmem %s322_s29, 128 }
  0x41   : > { %436 = vmatpush3.msra.mxu0 %v221_v2  ;;  %p576_p1 = scmp.ne.s32.totalorder %s322_s29, %s575_s6  ;;  %s667_s7 = smov [#allocation7]  }
  0x42   : > { %437 = vmatprep.subr.mxu0 %v665_v0  ;;  %s579_s10 = sshll.u32 %s667_s7, 4  ;;  %s580_s10 = int_to_ptr.vmem [resolvable:$false] %s579_s10 }
  0x43   : > { %438 = vmatpush3.msra.mxu0 %v220_v3  ;;  %p577_p8 = pnand %p576_p1, %p775_p13  ;;  %s581_s15 = scalar_lea.vmem %s580_s10, 256 }
  0x44   : > { %439 = vmatprep.subr.mxu0 %v665_v0  ;;  %p582_p0 = scmp.lt.s32.totalorder %s322_s29, %s580_s10  ;;  %p583_p2 = scmp.lt.s32.totalorder %s581_s15, %s575_s6 }
  0x45   : > { %440 = vmatpush3.msra.mxu0 %v219_v4  ;;  %p578_p10 = pneg %p577_p8 }
  0x46   : > { %442 = vmatmul.mubr.msk.f32.vlgmr.msra.gmra.mxu0 %vm230_vm1, %v218_v5  ;;  %p584_p3 = por %p583_p2, %p582_p0 }
  0x48   : > { %p585_p5 = pnand %p584_p3, %p578_p10 }
 0x106   : > { %v300_v7 = vpop.f32.mrf.mxu0 }
 0x107   : > { %v301_v8 = vadd.f32 %v422_v6, %v300_v7 }
 0x108   : > { %v443_v9 = vpop.f32.mrf.mxu0 }
 0x109   : > { %v304_v10 = vmul.f32 0.35355338, %v301_v8 }
 0x10b   : > { %305 = vst.msk [vmem:[%s217_s27] sm:$0xff] %vm230_vm1, %v304_v10 }
 0x10c   : > { %588 = shalt.err (!%p585_p5)
}
 0x10d   : > { %s589_s25 = scalar_lea.hbm %s319_s21, 128  ;;  %s593_s18 = scalar_lea.hbm %s861_s3, 256 }
 0x10e   : > { %p590_p7 = scmp.ne.s32.totalorder %s319_s21, %s589_s25  ;;  %p594_p9 = scmp.lt.s32.totalorder %s319_s21, %s861_s3 }
 0x10f   : > { %p595_p11 = scmp.lt.s32.totalorder %s593_s18, %s589_s25 }
 0x110   : > { %p591_p6 = pnand %p590_p7, %p775_p13 }
 0x111   : > { %p596_p12 = por %p595_p11, %p594_p9 }
 0x112   : > { %p592_p4 = pneg %p591_p6 }
 0x114   : > { %p597_p1 = pnand %p596_p12, %p592_p4 }
 0x116   : > { %600 = shalt.err (!%p597_p1)
}
 0x117   : > { %450 = dma.vmem_to_hbm [thread:$0]  (%p775_p13), %s322_s29, 128, %s319_s21, %s307_s5  }
 0x118 PF: > { %s333_s22 = sand.u32 1, %s639_s12   ;;  %p873_p8 = scmp.ne.s32.totalorder %s866_s23, 0 }
 0x119   : > { %p874_p10 = scmp.ge.s32.totalorder %s659_s17, 2  ;;  %s334_s24 = scalar_lea.sflag [#allocation4], %s333_s22 }
 0x11b   : > { %p461_p0 = pnand %p874_p10, %p873_p8 }
 0x11d   : > { %p462_p2 = pneg %p461_p0 }
 0x11f   : > { %634 = dma.done.wait (%p462_p2), %s334_s24, 128  }
 0x120   : > { %636 = vsyncadd (%p462_p2), %s334_s24, 4294967168  ;;  %s20_s17 = sadd.s32 1, %s659_s17   ;;  %s875_s12 = smov %s643_s13 }
 0x121   : > { %p17_p3 = scmp.ge.s32.totalorder %s20_s17, 4   ;;  %s876_s13 = smov %s647_s14 }
 0x122   : > { %s877_s14 = smov %s784_s19  ;;  %s878_s15 = smov %s655_s16 }
 0x123   : > { %s879_s16 = smov %s881_s28  ;;  %19 = sbr.rel (!%p17_p3) target bundleno = 7 (0x7), region = 81 }
 0x128   :  { %339 = vsyncpa [#allocation3], 1 }
 0x129   :  { %341 = vsyncpa [#allocation3 + $0x1], 1 }
 0x12a   :  { %342 = vsyncpa [#allocation6], 1 }
 0x12b   :  { %343 = vsyncpa [#allocation4], 1 }
 0x12c   :  { %345 = vsyncpa [#allocation4 + $0x1], 1 }

</bundles_post_ra>
